<compile_context>
chip_gen: v7x
topology: tpu7x:2x2x1
jax: 0.10.0
libtpu: 0.0.40
codegen_flags: <defaults>
</compile_context>

<pallas_src>
import jax
import jax.numpy as jnp
from jax.experimental import pallas as pl
from jax.experimental.pallas import tpu as pltpu

_INV_SQRT2 = 0.7071067811865475


def token_agg_kernel(x_ref, gamma_ref, beta_ref, w1_ref, b1_ref,
                     w2_ref, b2_ref, o_ref):
    TB, N, D = x_ref.shape
    K = o_ref.shape[1]

    xf = x_ref[...].reshape(TB * N, D)               # flatten batches into rows

    # --- LayerNorm over channels (eps=1e-5, biased variance: matches
    #     nn.LayerNorm), single-pass moments: var = E[x^2] - mean^2.
    mean = jnp.mean(xf, axis=-1, keepdims=True)
    msq = jnp.mean(xf * xf, axis=-1, keepdims=True)
    var = msq - mean * mean
    xn = (xf - mean) * jax.lax.rsqrt(var + 1e-5)
    xn = xn * gamma_ref[...] + beta_ref[...]          # (1, D) broadcasts

    # --- Linear(D -> H): bf16 operands on the MXU, f32 accumulation.
    h = jnp.dot(xn.astype(jnp.bfloat16), w1_ref[...],
                preferred_element_type=jnp.float32) + b1_ref[...]
    # exact-erf GELU (nn.GELU(approximate='none')); divide -> constant multiply.
    h = 0.5 * h * (1.0 + jax.lax.erf(h * _INV_SQRT2))

    # --- Linear(H -> K); the softmax pre-scale is already folded into w2/b2.
    logits = jnp.dot(h.astype(jnp.bfloat16), w2_ref[...],
                     preferred_element_type=jnp.float32) + b2_ref[...]
    logits = logits.reshape(TB, N, K)

    # --- softmax over tokens (PyTorch softmax(dim=2) of the (B, K, N) view),
    #     computed on (TB, N, K) directly — no (K, N) transpose materialized.
    m = jnp.max(logits, axis=1, keepdims=True)
    e = jnp.exp(logits - m)
    attn = e / jnp.sum(e, axis=1, keepdims=True)      # exact normalization

    # --- bmm(weight, x): batched contraction over tokens, bf16 operands,
    #     f32 accumulation.  x re-read from the VMEM ref (cheap vld) rather
    #     than kept live through the MLP.
    o_ref[...] = jnp.einsum("bnk,bnd->bkd",
                            attn.astype(jnp.bfloat16),
                            x_ref[...].astype(jnp.bfloat16),
                            preferred_element_type=jnp.float32)


def _vmem_capacity_bytes():
    try:
        return int(pltpu.get_tpu_info().vmem_capacity_bytes)
    except Exception:
        return 64 * 1024 * 1024   # conservative fallback (v7x-class per-core VMEM)


def _pick_tb(B, N, D, H, K, vmem_cap):
    """Batches per grid step: largest divisor of B whose working set fits
    ~50% of this generation's physical VMEM (32 MiB on v7x, 64 MiB on
    v5e/v6e), keeping >= 4 grid steps when B allows (v7x dual-TC pipelining).
    Divisor choice means no padding / extra HBM copy of x."""
    budget = int(vmem_cap * 0.5)
    # resident weights (bf16) + biases/affine (f32), double-buffered
    fixed = 2 * (2 * (D * H + H * K) + 4 * (2 * D + H + K))
    budget = max(budget - fixed, 1)
    per_b = (4 * 2 * N * D        # x block f32, double-buffered
             + 4 * 2 * K * D      # out block f32, double-buffered
             + 4 * N * D          # normalized activations (f32)
             + 2 * 2 * N * D      # bf16 copies fed to the MXU
             + 4 * N * H          # hidden activations
             + 4 * 3 * N * K)     # logits / exp / attn
    tb_cap = max(1, budget // max(per_b, 1))
    if B >= 4:
        tb_cap = min(tb_cap, B // 4)
    tb_cap = min(max(tb_cap, 1), B)

    best, best_aligned = 1, 0
    for t in range(1, tb_cap + 1):
        if B % t == 0:
            best = t
            if (t * N) % 8 == 0:
                best_aligned = t
    # prefer a sublane-aligned matmul M dim (TB*N % 8 == 0) if it costs <= 2x
    if best_aligned > 0 and best_aligned * 2 >= best:
        return best_aligned
    return best


def token_aggregation(x, gamma, beta, w1, b1, w2, b2, scale):
    """x: (B, N, D) f32 (batch, tokens, channels).  Returns (B, K, D) f32."""
    B, N, D = x.shape
    H = w1.shape[1]
    K = w2.shape[1]

    vmem_cap = _vmem_capacity_bytes()
    TB = _pick_tb(B, N, D, H, K, vmem_cap)

    # Fold the softmax pre-scale into the last linear (exact rewrite:
    # (h @ w2 + b2) * s == h @ (w2 * s) + b2 * s).
    scale_s = jnp.asarray(scale, jnp.float32).reshape(())
    w1_b = w1.astype(jnp.bfloat16)                            # (D, H) bf16
    w2_b = (w2 * scale_s).astype(jnp.bfloat16)                # (H, K) bf16
    b2_s = (b2 * scale_s).reshape(1, K).astype(jnp.float32)
    b1_2 = b1.reshape(1, H).astype(jnp.float32)
    gamma2 = gamma.reshape(1, D).astype(jnp.float32)
    beta2 = beta.reshape(1, D).astype(jnp.float32)

    cost = pl.CostEstimate(
        flops=2 * B * N * (D * H + H * K + K * D) + 10 * B * N * D,
        transcendentals=B * N * (H + K),
        bytes_accessed=4 * (B * N * D + B * K * D + 2 * D + H + K)
                       + 2 * (D * H + H * K),
    )

    out = pl.pallas_call(
        token_agg_kernel,
        out_shape=jax.ShapeDtypeStruct((B, K, D), jnp.float32),
        grid=(B // TB,),
        in_specs=[
            pl.BlockSpec((TB, N, D), lambda b: (b, 0, 0)),   # x, TB batches/step
            pl.BlockSpec((1, D), lambda b: (0, 0)),          # LN gamma (resident)
            pl.BlockSpec((1, D), lambda b: (0, 0)),          # LN beta
            pl.BlockSpec((D, H), lambda b: (0, 0)),          # Linear1 weight (bf16)
            pl.BlockSpec((1, H), lambda b: (0, 0)),          # Linear1 bias
            pl.BlockSpec((H, K), lambda b: (0, 0)),          # Linear2 weight (bf16, *scale)
            pl.BlockSpec((1, K), lambda b: (0, 0)),          # Linear2 bias (*scale)
        ],
        out_specs=pl.BlockSpec((TB, K, D), lambda b: (b, 0, 0)),
        compiler_params=pltpu.CompilerParams(
            dimension_semantics=("parallel",),
            vmem_limit_bytes=int(vmem_cap * 0.8),
        ),
        cost_estimate=cost,
    )(x.astype(jnp.float32), gamma2, beta2, w1_b, b1_2, w2_b, b2_s)
    return out


def _reference(x, gamma, beta, w1, b1, w2, b2, scale):
    mean = jnp.mean(x, axis=-1, keepdims=True)
    var = jnp.mean((x - mean) ** 2, axis=-1, keepdims=True)
    xn = (x - mean) * jax.lax.rsqrt(var + 1e-5) * gamma + beta
    h = xn @ w1 + b1
    h = 0.5 * h * (1.0 + jax.lax.erf(h * _INV_SQRT2))
    w = h @ w2 + b2                              # (B, N, K)
    logits = jnp.swapaxes(w, 1, 2) * scale       # (B, K, N)
    attn = jax.nn.softmax(logits, axis=2)
    return jnp.einsum("bkn,bnd->bkd", attn, x)


if __name__ == "__main__":
    # Module hyperparams (small, consistent with __init__):
    #   dim=32, dim_ratio=0.2 -> hidden_dim=6, keeped_patches=8
    B, N, D = 2, 16, 32
    H = int(D * 0.2)          # 6
    K = 8

    key = jax.random.PRNGKey(0)
    kx, kw1, kw2 = jax.random.split(key, 3)

    x = jax.random.normal(kx, (B, N, D), dtype=jnp.float32)

    # Deterministic parameter init (synthetic; not a checkpoint load).
    gamma = jnp.ones((D,), jnp.float32)
    beta = jnp.zeros((D,), jnp.float32)
    w1 = jax.random.normal(kw1, (D, H), dtype=jnp.float32) * 0.05
    b1 = jnp.zeros((H,), jnp.float32)
    w2 = jax.random.normal(kw2, (H, K), dtype=jnp.float32) * 0.05
    b2 = jnp.zeros((K,), jnp.float32)
    scale = jnp.ones((1, 1, 1), jnp.float32)      # nn.Parameter(torch.ones(1,1,1))

    out = token_aggregation(x, gamma, beta, w1, b1, w2, b2, scale)
    out = jax.block_until_ready(out)

    ref = _reference(x, gamma, beta, w1, b1, w2, b2, scale)
    assert out.shape == (B, K, D)
    # bf16 MXU operands (f32 accumulation) -> tolerance retuned from 1e-4.
    assert jnp.allclose(out, ref, atol=2e-2, rtol=2e-2), "mismatch vs reference"

    print("KERNEL_OK")
</pallas_src>

<mosaic_0001>
module attributes {stable_mosaic.version = 11 : i64} {
  func.func @token_agg_kernel(%arg0: i32, %arg1: memref<2x16x32xf32, #tpu.memory_space<vmem>>, %arg2: memref<1x32xf32, #tpu.memory_space<vmem>>, %arg3: memref<1x32xf32, #tpu.memory_space<vmem>>, %arg4: memref<32x6xbf16, #tpu.memory_space<vmem>>, %arg5: memref<1x6xf32, #tpu.memory_space<vmem>>, %arg6: memref<6x8xbf16, #tpu.memory_space<vmem>>, %arg7: memref<1x8xf32, #tpu.memory_space<vmem>>, %arg8: memref<2x8x32xf32, #tpu.memory_space<vmem>>) attributes {dimension_semantics = [#tpu.dimension_semantics<parallel>], iteration_bounds = array<i64: 1>, scalar_prefetch = 0 : i64, scratch_operands = 0 : i64, tpu.core_type = #tpu.core_type<tc>, window_params = [{transform_indices = @transform_0, window_bounds = array<i64: 2, 16, 32>}, {pipeline_mode = #tpu.pipeline_mode<synchronous>, transform_indices = @transform_1, window_bounds = array<i64: 1, 32>}, {pipeline_mode = #tpu.pipeline_mode<synchronous>, transform_indices = @transform_2, window_bounds = array<i64: 1, 32>}, {pipeline_mode = #tpu.pipeline_mode<synchronous>, transform_indices = @transform_3, window_bounds = array<i64: 32, 6>}, {pipeline_mode = #tpu.pipeline_mode<synchronous>, transform_indices = @transform_4, window_bounds = array<i64: 1, 6>}, {pipeline_mode = #tpu.pipeline_mode<synchronous>, transform_indices = @transform_5, window_bounds = array<i64: 6, 8>}, {pipeline_mode = #tpu.pipeline_mode<synchronous>, transform_indices = @transform_6, window_bounds = array<i64: 1, 8>}, {transform_indices = @transform_7, window_bounds = array<i64: 2, 8, 32>}]} {
    %c0 = arith.constant 0 : index
    %c0_0 = arith.constant 0 : index
    %c0_1 = arith.constant 0 : index
    %0 = vector.load %arg1[%c0, %c0_0, %c0_1] : memref<2x16x32xf32, #tpu.memory_space<vmem>>, vector<2x16x32xf32>
    %1 = vector.shape_cast %0 : vector<2x16x32xf32> to vector<32x32xf32>
    %cst = arith.constant dense<0.000000e+00> : vector<32xf32>
    %2 = vector.multi_reduction <add>, %1, %cst [1] : vector<32x32xf32> to vector<32xf32>
    %3 = vector.shape_cast %2 : vector<32xf32> to vector<32x1xf32>
    %cst_2 = arith.constant 3.200000e+01 : f32
    %4 = vector.broadcast %cst_2 : f32 to vector<32x1xf32>
    %5 = arith.divf %3, %4 : vector<32x1xf32>
    %6 = arith.mulf %1, %1 : vector<32x32xf32>
    %cst_3 = arith.constant dense<0.000000e+00> : vector<32xf32>
    %7 = vector.multi_reduction <add>, %6, %cst_3 [1] : vector<32x32xf32> to vector<32xf32>
    %8 = vector.shape_cast %7 : vector<32xf32> to vector<32x1xf32>
    %cst_4 = arith.constant 3.200000e+01 : f32
    %9 = vector.broadcast %cst_4 : f32 to vector<32x1xf32>
    %10 = arith.divf %8, %9 : vector<32x1xf32>
    %11 = arith.mulf %5, %5 : vector<32x1xf32>
    %12 = arith.subf %10, %11 : vector<32x1xf32>
    %13 = vector.broadcast %5 : vector<32x1xf32> to vector<32x32xf32>
    %14 = arith.subf %1, %13 : vector<32x32xf32>
    %cst_5 = arith.constant 9.99999974E-6 : f32
    %15 = vector.broadcast %cst_5 : f32 to vector<32x1xf32>
    %16 = arith.addf %12, %15 : vector<32x1xf32>
    %17 = math.rsqrt %16 : vector<32x1xf32>
    %18 = vector.broadcast %17 : vector<32x1xf32> to vector<32x32xf32>
    %19 = arith.mulf %14, %18 : vector<32x32xf32>
    %c0_6 = arith.constant 0 : index
    %c0_7 = arith.constant 0 : index
    %20 = vector.load %arg2[%c0_6, %c0_7] : memref<1x32xf32, #tpu.memory_space<vmem>>, vector<1x32xf32>
    %21 = vector.broadcast %20 : vector<1x32xf32> to vector<32x32xf32>
    %22 = arith.mulf %19, %21 : vector<32x32xf32>
    %c0_8 = arith.constant 0 : index
    %c0_9 = arith.constant 0 : index
    %23 = vector.load %arg3[%c0_8, %c0_9] : memref<1x32xf32, #tpu.memory_space<vmem>>, vector<1x32xf32>
    %24 = vector.broadcast %23 : vector<1x32xf32> to vector<32x32xf32>
    %25 = arith.addf %22, %24 : vector<32x32xf32>
    %26 = arith.truncf %25 : vector<32x32xf32> to vector<32x32xbf16>
    %c0_10 = arith.constant 0 : index
    %c0_11 = arith.constant 0 : index
    %27 = vector.load %arg4[%c0_10, %c0_11] : memref<32x6xbf16, #tpu.memory_space<vmem>>, vector<32x6xbf16>
    %cst_12 = arith.constant dense<0.000000e+00> : vector<32x6xf32>
    %28 = tpu.matmul %26, %27, %cst_12 {dimension_numbers = #tpu.dot_dimension_numbers<[1], [0], [0], [1], [0, 0, 1, 1], [], []>} : vector<32x32xbf16>, vector<32x6xbf16>, vector<32x6xf32> -> vector<32x6xf32>
    %c0_13 = arith.constant 0 : index
    %c0_14 = arith.constant 0 : index
    %29 = vector.load %arg5[%c0_13, %c0_14] : memref<1x6xf32, #tpu.memory_space<vmem>>, vector<1x6xf32>
    %30 = vector.broadcast %29 : vector<1x6xf32> to vector<32x6xf32>
    %31 = arith.addf %28, %30 : vector<32x6xf32>
    %cst_15 = arith.constant 5.000000e-01 : f32
    %32 = vector.broadcast %cst_15 : f32 to vector<32x6xf32>
    %33 = arith.mulf %32, %31 : vector<32x6xf32>
    %cst_16 = arith.constant 0.707106769 : f32
    %34 = vector.broadcast %cst_16 : f32 to vector<32x6xf32>
    %35 = arith.mulf %31, %34 : vector<32x6xf32>
    %36 = math.erf %35 : vector<32x6xf32>
    %cst_17 = arith.constant 1.000000e+00 : f32
    %37 = vector.broadcast %cst_17 : f32 to vector<32x6xf32>
    %38 = arith.addf %37, %36 : vector<32x6xf32>
    %39 = arith.mulf %33, %38 : vector<32x6xf32>
    %40 = arith.truncf %39 : vector<32x6xf32> to vector<32x6xbf16>
    %c0_18 = arith.constant 0 : index
    %c0_19 = arith.constant 0 : index
    %41 = vector.load %arg6[%c0_18, %c0_19] : memref<6x8xbf16, #tpu.memory_space<vmem>>, vector<6x8xbf16>
    %cst_20 = arith.constant dense<0.000000e+00> : vector<32x8xf32>
    %42 = tpu.matmul %40, %41, %cst_20 {dimension_numbers = #tpu.dot_dimension_numbers<[1], [0], [0], [1], [0, 0, 1, 1], [], []>} : vector<32x6xbf16>, vector<6x8xbf16>, vector<32x8xf32> -> vector<32x8xf32>
    %c0_21 = arith.constant 0 : index
    %c0_22 = arith.constant 0 : index
    %43 = vector.load %arg7[%c0_21, %c0_22] : memref<1x8xf32, #tpu.memory_space<vmem>>, vector<1x8xf32>
    %44 = vector.broadcast %43 : vector<1x8xf32> to vector<32x8xf32>
    %45 = arith.addf %42, %44 : vector<32x8xf32>
    %46 = vector.shape_cast %45 : vector<32x8xf32> to vector<2x16x8xf32>
    %cst_23 = arith.constant dense<0xFF800000> : vector<2x8xf32>
    %47 = vector.multi_reduction <maximumf>, %46, %cst_23 [1] : vector<2x16x8xf32> to vector<2x8xf32>
    %48 = vector.shape_cast %47 : vector<2x8xf32> to vector<2x1x8xf32>
    %49 = vector.broadcast %48 : vector<2x1x8xf32> to vector<2x16x8xf32>
    %50 = arith.subf %46, %49 : vector<2x16x8xf32>
    %51 = math.exp %50 : vector<2x16x8xf32>
    %cst_24 = arith.constant dense<0.000000e+00> : vector<2x8xf32>
    %52 = vector.multi_reduction <add>, %51, %cst_24 [1] : vector<2x16x8xf32> to vector<2x8xf32>
    %53 = vector.shape_cast %52 : vector<2x8xf32> to vector<2x1x8xf32>
    %54 = vector.broadcast %53 : vector<2x1x8xf32> to vector<2x16x8xf32>
    %55 = arith.divf %51, %54 : vector<2x16x8xf32>
    %56 = arith.truncf %55 : vector<2x16x8xf32> to vector<2x16x8xbf16>
    %c0_25 = arith.constant 0 : index
    %c0_26 = arith.constant 0 : index
    %c0_27 = arith.constant 0 : index
    %57 = vector.load %arg1[%c0_25, %c0_26, %c0_27] : memref<2x16x32xf32, #tpu.memory_space<vmem>>, vector<2x16x32xf32>
    %58 = arith.truncf %57 : vector<2x16x32xf32> to vector<2x16x32xbf16>
    "tpu.trace_start"() <{level = 10 : i32, message = "bnk,bnd->bkd"}> : () -> ()
    %cst_28 = arith.constant dense<0.000000e+00> : vector<2x8x32xf32>
    %59 = tpu.matmul %56, %58, %cst_28 {dimension_numbers = #tpu.dot_dimension_numbers<[1], [1], [2], [2], [0, 0, 0, 2, 1, 2], [0], [0]>} : vector<2x16x8xbf16>, vector<2x16x32xbf16>, vector<2x8x32xf32> -> vector<2x8x32xf32>
    "tpu.trace_stop"() : () -> ()
    %c0_29 = arith.constant 0 : index
    %c0_30 = arith.constant 0 : index
    %c0_31 = arith.constant 0 : index
    %60 = vector.load %arg8[%c0_29, %c0_30, %c0_31] : memref<2x8x32xf32, #tpu.memory_space<vmem>>, vector<2x8x32xf32>
    tpu.vector_store %arg8[%c0_29, %c0_30, %c0_31], %59 {strides = array<i32>} : memref<2x8x32xf32, #tpu.memory_space<vmem>>, vector<2x8x32xf32>,
    return
  }
  func.func @transform_0(%arg0: i32) -> (i32, i32, i32) {
    %c0_i32 = arith.constant 0 : i32
    %c0_i32_0 = arith.constant 0 : i32
    %c0_i32_1 = arith.constant 0 : i32
    return %arg0, %c0_i32, %c0_i32_0 : i32, i32, i32
  }
  func.func @transform_1(%arg0: i32) -> (i32, i32) {
    %c0_i32 = arith.constant 0 : i32
    %c0_i32_0 = arith.constant 0 : i32
    %c0_i32_1 = arith.constant 0 : i32
    return %c0_i32, %c0_i32_0 : i32, i32
  }
  func.func @transform_2(%arg0: i32) -> (i32, i32) {
    %c0_i32 = arith.constant 0 : i32
    %c0_i32_0 = arith.constant 0 : i32
    %c0_i32_1 = arith.constant 0 : i32
    return %c0_i32, %c0_i32_0 : i32, i32
  }
  func.func @transform_3(%arg0: i32) -> (i32, i32) {
    %c0_i32 = arith.constant 0 : i32
    %c0_i32_0 = arith.constant 0 : i32
    %c0_i32_1 = arith.constant 0 : i32
    return %c0_i32, %c0_i32_0 : i32, i32
  }
  func.func @transform_4(%arg0: i32) -> (i32, i32) {
    %c0_i32 = arith.constant 0 : i32
    %c0_i32_0 = arith.constant 0 : i32
    %c0_i32_1 = arith.constant 0 : i32
    return %c0_i32, %c0_i32_0 : i32, i32
  }
  func.func @transform_5(%arg0: i32) -> (i32, i32) {
    %c0_i32 = arith.constant 0 : i32
    %c0_i32_0 = arith.constant 0 : i32
    %c0_i32_1 = arith.constant 0 : i32
    return %c0_i32, %c0_i32_0 : i32, i32
  }
  func.func @transform_6(%arg0: i32) -> (i32, i32) {
    %c0_i32 = arith.constant 0 : i32
    %c0_i32_0 = arith.constant 0 : i32
    %c0_i32_1 = arith.constant 0 : i32
    return %c0_i32, %c0_i32_0 : i32, i32
  }
  func.func @transform_7(%arg0: i32) -> (i32, i32, i32) {
    %c0_i32 = arith.constant 0 : i32
    %c0_i32_0 = arith.constant 0 : i32
    %c0_i32_1 = arith.constant 0 : i32
    return %arg0, %c0_i32, %c0_i32_0 : i32, i32, i32
  }
}

</mosaic_0001>

<bundles_post_ra>
// kernel: tpu_custom_call.1
= control target key start
LH: loop header
LB: loop body
LE: loop exit
PB: predicated region body
PF: predicated region fallthrough
CT: control target
= control target key end

     0   :  { %12 = vsyncpa [#allocation3], 0  ;;  %s777_s0 = inlined_call_operand.hbm [shape: f32[2,16,32], index: 0, kind: input, shape index: {}]   ;;  %s778_s1 = inlined_call_operand.vmem [shape: f32[1,32], index: 1, kind: input, shape index: {}]   ;;  %s779_s2 = inlined_call_operand.vmem [shape: f32[1,32], index: 2, kind: input, shape index: {}]   ;;  %s780_s3 = inlined_call_operand.vmem [shape: bf16[32,6], index: 3, kind: input, shape index: {}]   ;;  %s781_s4 = inlined_call_operand.vmem [shape: f32[1,6], index: 4, kind: input, shape index: {}]   ;;  %s782_s5 = inlined_call_operand.vmem [shape: bf16[6,8], index: 5, kind: input, shape index: {}]   ;;  %s783_s6 = inlined_call_operand.vmem [shape: f32[1,8], index: 6, kind: input, shape index: {}]   ;;  %s784_s7 = inlined_call_operand.hbm [shape: f32[2,8,32], index: 7, kind: output, shape index: {}]  }
   0x1   :  { %13 = vsyncpa [#allocation4], 0  ;;  %s632_s24 = smov [#allocation2]   ;;  %s584_s28 = scalar_lea.hbm %s777_s0, 512 }
   0x2   :  { %s19_s25 = sshll.u32 %s632_s24, 4  ;;  %p585_p0 = scmp.ne.s32.totalorder %s777_s0, %s584_s28  ;;  %s20_s25 = int_to_ptr.vmem [resolvable:$true] %s19_s25 }
   0x3   :  { %p588_p1 = scmp.lt.u32.totalorder %s584_s28, %s777_s0 }
   0x5   :  { %p590_p2 = pnand %p588_p1, %p585_p0 }
   0x7   :  { %593 = shalt.err (!%p590_p2)
}
   0x8   :  { %s594_s10 = scalar_lea.vmem %s20_s25, 512  ;;  %p599_p4 = scmp.lt.s32.totalorder %s20_s25, %s20_s25 }
   0x9   :  { %p595_p3 = scmp.ne.s32.totalorder %s20_s25, %s594_s10  ;;  %p600_p5 = scmp.lt.s32.totalorder %s594_s10, %s594_s10 }
   0xb   :  { %p601_p6 = por %p600_p5, %p599_p4 }
   0xd   :  { %p602_p7 = pnand %p601_p6, %p595_p3 }
   0xf   :  { %605 = shalt.err (!%p602_p7)
}
  0x10   :  { %s633_s11 = smov 128   ;;  %s634_s12 = smov 8  }
  0x11   :  { %25 = dma.hbm_to_vmem [thread:$0]  %s777_s0, 512, %s20_s25, [#allocation3], %s633_s11, %s633_s11, %s634_s12  }
  0x12   :  { %628 = dma.done.wait [#allocation3], 512  }
  0x13   :  { %629 = vsyncadd [#allocation3], 4294966784  ;;  %vm46_vm0 = vcmask 261120   ;;  %v693_v0 = vld [vmem:[#allocation2 + $0x10] sm:$0xff]  ;;  %v695_v1 = vld [vmem:[#allocation2] sm:$0xff]  ;;  %vm247_vm1 = vcmask 1042432  }
  0x14   :  { %v697_v2 = vld [vmem:[#allocation2 + $0x18] sm:$0xff]  ;;  %v53_v3 = vsel %vm46_vm0, %v693_v0, 0.0  ;;  %v47_v4 = vsel %vm46_vm0, %v695_v1, 0.0  ;;  %v703_v5 = vld [vmem:[#allocation2 + $0x8] sm:$0xff]  ;;  %v64_v9 = vmul.f32 %v695_v1, %v695_v1  ;;  %v66_v13 = vmul.f32 %v693_v0, %v693_v0  ;;  %v554_v16 = vld [vmem:[%s780_s3] sm:$0xff]  }
  0x15   :  { %54 = vadd.xlane.f32.xlu1 %v53_v3  ;;  %48 = vadd.xlane.f32.xlu0 %v47_v4  ;;  %v56_v6 = vsel %vm46_vm0, %v697_v2, 0.0  ;;  %v50_v7 = vsel %vm46_vm0, %v703_v5, 0.0  ;;  %v65_v8 = vmul.f32 %v703_v5, %v703_v5  ;;  %v67_v12 = vmul.f32 %v697_v2, %v697_v2  ;;  %v555_v17 = vld [vmem:[%s780_s3 + $0x8] sm:$0xff]   ;;  %v497_v49 = vld [vmem:[%s778_s1] ss:$0 sm:$0xff] }
  0x16   :  { %v68_v11 = vsel %vm46_vm0, %v64_v9, 0.0  ;;  %v74_v15 = vsel %vm46_vm0, %v66_v13, 0.0  ;;  %520 = vmatprep.subr.bf16.mxu0 %v554_v16  ;;  %v498_v53 = vld [vmem:[%s779_s2] ss:$0 sm:$0xff]  ;;  %vm240_vm2 = vcmask 48128   ;;  %vm636_vm3 = vmmov 0  }
  0x17   :  { %v71_v10 = vsel %vm46_vm0, %v65_v8, 0.0  ;;  %v77_v14 = vsel %vm46_vm0, %v67_v12, 0.0  ;;  %521 = vmatpush3.bf16.msra.mxu0 %v554_v16  ;;  %v499_v12 = vld [vmem:[%s781_s4] ss:$0 sm:$0xff]  ;;  %vm300_vm4 = vcmask 64512   ;;  %vm375_vm5 = vcmask 130048  }
  0x18   :  { %522 = vmatprep.subr.bf16.mxu0 %v555_v17 }
  0x19   :  { %57 = vadd.xlane.f32.xlu1 %v56_v6  ;;  %51 = vadd.xlane.f32.xlu0 %v50_v7 }
  0x1b   :  { %523 = vmatpush3.bf16.msra.mxu0 %v555_v17 }
  0x1d   :  { %72 = vadd.xlane.f32.xlu1 %v71_v10  ;;  %69 = vadd.xlane.f32.xlu0 %v68_v11  ;;  %v232_v10 = vld [vmem:[%s782_s5] sm:$0x7] }
  0x1e   :  { %546 = vmatprep.subr.msk.bf16.mxu1 %vm247_vm1, %v232_v10  ;;  %v249_v11 = vsel %vm247_vm1, %v232_v10, 0 }
  0x1f   :  { %529 = vmatpush3.bf16.msra.mxu1 %v249_v11 }
  0x21   :  { %78 = vadd.xlane.f32.xlu1 %v77_v14  ;;  %75 = vadd.xlane.f32.xlu0 %v74_v15 }
  0xa2   :  { %v55_v18 = vpop.xlane.xlu1 %54  ;;  %v49_v19 = vpop.xlane.xlu0 %48 }
  0xa3   :  { %v60_v22 = vmul.f32 0.03125, %v49_v19  ;;  %v62_v24 = vmul.f32 0.03125, %v55_v18 }
  0xa5   :  { %v84_v28 = vmul.f32 %v60_v22, %v60_v22  ;;  %v86_v34 = vmul.f32 %v62_v24, %v62_v24  ;;  %v92_v48 = vsub.f32 %v695_v1, %v60_v22  ;;  %v94_v57 = vsub.f32 %v693_v0, %v62_v24 }
  0xa6   :  { %v58_v20 = vpop.xlane.xlu1 %57  ;;  %v52_v21 = vpop.xlane.xlu0 %51 }
  0xa7   :  { %v61_v23 = vmul.f32 0.03125, %v52_v21  ;;  %v63_v25 = vmul.f32 0.03125, %v58_v20 }
  0xa9   :  { %v85_v29 = vmul.f32 %v61_v23, %v61_v23  ;;  %v87_v35 = vmul.f32 %v63_v25, %v63_v25  ;;  %v93_v46 = vsub.f32 %v703_v5, %v61_v23  ;;  %v95_v54 = vsub.f32 %v697_v2, %v63_v25 }
  0xaa   :  { %v73_v26 = vpop.xlane.xlu1 %72  ;;  %v70_v27 = vpop.xlane.xlu0 %69 }
  0xab   :  { %v81_v30 = vmul.f32 0.03125, %v73_v26  ;;  %v80_v31 = vmul.f32 0.03125, %v70_v27 }
  0xad   :  { %v89_v32 = vsub.f32 %v81_v30, %v85_v29  ;;  %v88_v33 = vsub.f32 %v80_v31, %v84_v28 }
  0xae   :  { %v79_v36 = vpop.xlane.xlu1 %78  ;;  %v76_v37 = vpop.xlane.xlu0 %75 }
  0xaf   :  { %v97_v38 = vadd.f32 1e-05, %v89_v32  ;;  %v96_v39 = vadd.f32 1e-05, %v88_v33  ;;  %v83_v40 = vmul.f32 0.03125, %v79_v36  ;;  %v82_v41 = vmul.f32 0.03125, %v76_v37 }
  0xb1   :  { %556 = vrsqrt.f32 %v97_v38  ;;  %v91_v42 = vsub.f32 %v83_v40, %v87_v35  ;;  %v90_v43 = vsub.f32 %v82_v41, %v86_v34 }
  0xb2   :  { %558 = vrsqrt.f32 %v96_v39 }
  0xb3   :  { %v99_v44 = vadd.f32 1e-05, %v91_v42  ;;  %v98_v45 = vadd.f32 1e-05, %v90_v43  ;;  %v357_v43 = vpack.c.bf16 %v703_v5, %v695_v1 }
  0xb5   :  { %560 = vrsqrt.f32 %v99_v44  ;;  %v358_v44 = vpack.c.bf16 %v697_v2, %v693_v0 }
  0xb6   :  { %562 = vrsqrt.f32 %v98_v45  ;;  %v635_v45 = vmov 0.0  }
  0xb7   :  { %534 = vmatprep.subr.bf16.mxu1 %v635_v45  ;;  %540 = vmatprep.subr.bf16.mxu0 %v635_v45 }
  0xbb   :  { %v557_v47 = vpop.eup %556 }
  0xbc   :  { %v559_v50 = vpop.eup %558  ;;  %v105_v51 = vmul.f32 %v557_v47, %v93_v46  ;;  %v504_v46 = vld [vmem:[%s783_s6] ss:$0 sm:$0xff]  ;;  %s637_s6 = smov [#allocation5]  }
  0xbd   :  { %v104_v52 = vmul.f32 %v559_v50, %v92_v48  ;;  %s485_s23 = sshll.u32 %s637_s6, 4  ;;  %s486_s23 = int_to_ptr.vmem [resolvable:$true] %s485_s23 }
  0xbe   :  { %v116_v55 = vmul.f32 %v497_v49, %v105_v51  ;;  %s606_s24 = scalar_lea.vmem %s486_s23, 256  ;;  %p611_p9 = scmp.lt.s32.totalorder %s486_s23, %s486_s23 }
  0xbf   :  { %v561_v56 = vpop.eup %560  ;;  %v115_v58 = vmul.f32 %v497_v49, %v104_v52  ;;  %p607_p8 = scmp.ne.s32.totalorder %s486_s23, %s606_s24  ;;  %p612_p10 = scmp.lt.s32.totalorder %s606_s24, %s606_s24 }
  0xc0   :  { %v563_v59 = vpop.eup %562  ;;  %v127_v60 = vadd.f32 %v498_v53, %v116_v55  ;;  %v107_v61 = vmul.f32 %v561_v56, %v95_v54 }
  0xc1   :  { %v126_v62 = vadd.f32 %v498_v53, %v115_v58  ;;  %v106_v63 = vmul.f32 %v563_v59, %v94_v57  ;;  %p613_p11 = por %p612_p10, %p611_p9 }
  0xc2   :  { %v118_v3 = vmul.f32 %v497_v49, %v107_v61 }
  0xc3   :  { %v130_v4 = vpack.c.bf16 %v127_v60, %v126_v62  ;;  %v117_v6 = vmul.f32 %v497_v49, %v106_v63  ;;  %p614_p12 = pnand %p613_p11, %p607_p8 }
  0xc4   :  { %v129_v7 = vadd.f32 %v498_v53, %v118_v3 }
  0xc5   :  { %524 = vmatprep.mubr.msk.bf16.mxu0 %vm46_vm0, %v130_v4  ;;  %v128_v8 = vadd.f32 %v498_v53, %v117_v6 }
  0xc7   :  { %v131_v9 = vpack.c.bf16 %v129_v7, %v128_v8 }
  0xc9   :  { %525 = vmatmul.mubr.msk.bf16.vlgmr.msra.gmra.mrb[0].mxu0 %vm46_vm0, %v131_v9 }
  0xca   :  { %541 = vmatpush3.bf16.msra.mxu0 %v358_v44  ;;  %542 = vmatprep.mubr.msk.bf16.mxu0 %vm636_vm3, %v635_v45 }
 0x19c   :  { %v526_v13 = vpop.f32.mrb[0].mxu0 }
 0x19d   :  { %v204_v14 = vadd.f32 %v526_v13, %v499_v12  ;;  %v195_v15 = vpop.f32.mrb[1].mxu0 }
 0x19e   :  { %v196_v16 = vadd.f32 %v499_v12, %v195_v15  ;;  %v527_v17 = vpop.f32.mrb[2].mxu0 }
 0x19f   :  { %v216_v18 = vmul.f32 0.70710677, %v204_v14  ;;  %v207_v19 = vadd.f32 %v527_v17, %v499_v12  ;;  %v198_v20 = vpop.f32.mrb[3].mxu0  ;;  %v212_v31 = vmul.f32 0.5, %v204_v14 }
 0x1a0   :  { %v214_v21 = vmul.f32 0.70710677, %v196_v16  ;;  %v199_v22 = vadd.f32 %v499_v12, %v198_v20  ;;  %v210_v34 = vmul.f32 0.5, %v196_v16 }
 0x1a1   :  { %564 = verf.f32 %v216_v18  ;;  %v217_v23 = vmul.f32 0.70710677, %v207_v19  ;;  %v213_v32 = vmul.f32 0.5, %v207_v19 }
 0x1a2   :  { %566 = verf.f32 %v214_v21  ;;  %v215_v24 = vmul.f32 0.70710677, %v199_v22  ;;  %v211_v35 = vmul.f32 0.5, %v199_v22 }
 0x1a3   :  { %568 = verf.f32 %v217_v23 }
 0x1a4   :  { %570 = verf.f32 %v215_v24 }
 0x1ab   :  { %v565_v25 = vpop.eup %564 }
 0x1ac   :  { %v567_v26 = vpop.eup %566  ;;  %v224_v27 = vadd.f32 1.0, %v565_v25 }
 0x1ad   :  { %v569_v28 = vpop.eup %568  ;;  %v222_v29 = vadd.f32 1.0, %v567_v26 }
 0x1ae   :  { %v571_v30 = vpop.eup %570  ;;  %v225_v33 = vadd.f32 1.0, %v569_v28  ;;  %v228_v37 = vmul.f32 %v224_v27, %v212_v31 }
 0x1af   :  { %v223_v36 = vadd.f32 1.0, %v571_v30  ;;  %v226_v39 = vmul.f32 %v222_v29, %v210_v34 }
 0x1b0   :  { %v229_v38 = vmul.f32 %v225_v33, %v213_v32 }
 0x1b1   :  { %v227_v40 = vmul.f32 %v223_v36, %v211_v35 }
 0x1b2   :  { %v231_v41 = vpack.c.bf16 %v229_v38, %v228_v37 }
 0x1b3   :  { %v230_v42 = vpack.c.bf16 %v227_v40, %v226_v39 }
 0x1b5   :  { %530 = vmatprep.mubr.msk.bf16.mxu1 %vm240_vm2, %v230_v42 }
 0x1b6   :  { %531 = vmatmul.mubr.msk.bf16.vlgmr.msra.gmra.mrb[0].mxu1 %vm240_vm2, %v231_v41 }
 0x1b7   :  { %535 = vmatpush3.bf16.msra.mxu1 %v357_v43  ;;  %536 = vmatprep.mubr.msk.bf16.mxu1 %vm636_vm3, %v635_v45 }
 0x289   :  { %v532_v47 = vpop.f32.mrb[0].mxu1 }
 0x28a   :  { %v294_v48 = vadd.f32 %v532_v47, %v504_v46  ;;  %v285_v49 = vpop.f32.mrb[1].mxu1 }
 0x28b   :  { %v286_v1 = vadd.f32 %v504_v46, %v285_v49  ;;  %v533_v5 = vpop.f32.mrb[2].mxu1 }
 0x28c   :  { %v297_v50 = vadd.f32 %v533_v5, %v504_v46  ;;  %v288_v0 = vpop.f32.mrb[3].mxu1  ;;  %v310_v51 = vsel %vm300_vm4, %v294_v48, -inf }
 0x28d   :  { %v289_v2 = vadd.f32 %v504_v46, %v288_v0  ;;  %v301_v53 = vsel %vm300_vm4, %v286_v1, -inf }
 0x28e   :  { %v311_v52 = vsel %vm300_vm4, %v297_v50, -inf }
 0x28f   :  { %v312_v54 = vmax.f32 %v310_v51, %v311_v52  ;;  %v302_v55 = vsel %vm300_vm4, %v289_v2, -inf }
 0x290   :  { %v303_v56 = vmax.f32 %v301_v53, %v302_v55 }
 0x291   :  { %v313_v57 = vrot.slane %v312_v54, 4 }
 0x292   :  { %v304_v58 = vrot.slane %v303_v56, 4 }
 0x293   :  { %v314_v59 = vmax.f32 %v312_v54, %v313_v57 }
 0x294   :  { %v305_v60 = vmax.f32 %v303_v56, %v304_v58 }
 0x295   :  { %v315_v61 = vrot.slane %v314_v59, 2 }
 0x296   :  { %v306_v62 = vrot.slane %v305_v60, 2 }
 0x297   :  { %v316_v63 = vmax.f32 %v314_v59, %v315_v61 }
 0x298   :  { %v307_v3 = vmax.f32 %v305_v60, %v306_v62 }
 0x299   :  { %v317_v4 = vrot.slane %v316_v63, 1 }
 0x29a   :  { %v308_v6 = vrot.slane %v307_v3, 1 }
 0x29b   :  { %v318_v7 = vmax.f32 %v316_v63, %v317_v4 }
 0x29c   :  { %v309_v8 = vmax.f32 %v307_v3, %v308_v6 }
 0x29d   :  { %v321_v9 = vsub.f32 %v294_v48, %v318_v7  ;;  %v322_v10 = vsub.f32 %v297_v50, %v318_v7 }
 0x29e   :  { %v319_v11 = vsub.f32 %v286_v1, %v309_v8  ;;  %v320_v12 = vsub.f32 %v289_v2, %v309_v8 }
 0x29f   :  { %v327_v13 = vmul.f32 1.442695, %v321_v9  ;;  %v329_v14 = vmul.f32 1.442695, %v322_v10 }
 0x2a0   :  { %v323_v15 = vmul.f32 1.442695, %v319_v11  ;;  %v325_v16 = vmul.f32 1.442695, %v320_v12 }
 0x2a1   :  { %572 = vpow2.f32 %v327_v13 }
 0x2a2   :  { %574 = vpow2.f32 %v329_v14 }
 0x2a3   :  { %576 = vpow2.f32 %v323_v15 }
 0x2a4   :  { %578 = vpow2.f32 %v325_v16 }
 0x2ab   :  { %v573_v17 = vpop.eup %572 }
 0x2ac   :  { %v575_v18 = vpop.eup %574  ;;  %v340_v19 = vsel %vm300_vm4, %v573_v17, 0.0 }
 0x2ad   :  { %v577_v20 = vpop.eup %576  ;;  %v341_v21 = vsel %vm300_vm4, %v575_v18, 0.0 }
 0x2ae   :  { %v579_v22 = vpop.eup %578  ;;  %v342_v23 = vadd.f32 %v341_v21, %v340_v19  ;;  %v331_v24 = vsel %vm300_vm4, %v577_v20, 0.0 }
 0x2af   :  { %v332_v25 = vsel %vm300_vm4, %v579_v22, 0.0 }
 0x2b0   :  { %v343_v26 = vrot.slane %v342_v23, 4  ;;  %v333_v27 = vadd.f32 %v332_v25, %v331_v24 }
 0x2b2   :  { %v344_v28 = vadd.f32 %v343_v26, %v342_v23  ;;  %v334_v29 = vrot.slane %v333_v27, 4 }
 0x2b4   :  { %v335_v30 = vadd.f32 %v334_v29, %v333_v27  ;;  %v345_v31 = vrot.slane %v344_v28, 2 }
 0x2b6   :  { %v346_v32 = vadd.f32 %v345_v31, %v344_v28  ;;  %v336_v33 = vrot.slane %v335_v30, 2 }
 0x2b8   :  { %v347_v34 = vrot.slane %v346_v32, 1  ;;  %v337_v35 = vadd.f32 %v336_v33, %v335_v30 }
 0x2ba   :  { %v348_v36 = vadd.f32 %v347_v34, %v346_v32  ;;  %v338_v37 = vrot.slane %v337_v35, 1 }
 0x2bc   :  { %580 = vrcp.f32 %v348_v36  ;;  %v339_v38 = vadd.f32 %v338_v37, %v337_v35 }
 0x2be   :  { %582 = vrcp.f32 %v339_v38 }
 0x2c6   :  { %v581_v39 = vpop.eup %580 }
 0x2c7   :  { %v353_v40 = vmul.f32 %v581_v39, %v573_v17  ;;  %v354_v41 = vmul.f32 %v581_v39, %v575_v18 }
 0x2c8   :  { %v583_v42 = vpop.eup %582 }
 0x2c9   :  { %v356_v43 = vpack.c.bf16 %v354_v41, %v353_v40  ;;  %v350_v44 = vmul.f32 %v583_v42, %v577_v20  ;;  %v351_v45 = vmul.f32 %v583_v42, %v579_v22 }
 0x2cb   :  { %419 = vxpose.xlu1.c.b16.start.end [1/1] (short) (narrow) %v356_v43, 16  ;;  %v355_v46 = vpack.c.bf16 %v351_v45, %v350_v44 }
 0x2cd   :  { %359 = vxpose.xlu0.c.b16.start.end [1/1] (short) (narrow) %v355_v46, 16 }
 0x331   :  { %v427_v47 = vpop.trf.xlu1 }
 0x332   :  { %543 = vmatmul.mubr.msk.bf16.vlgmr.msra.gmra.mrb[4].mxu0 %vm375_vm5, %v427_v47 }
 0x333   :  { %v367_v48 = vpop.trf.xlu0 }
 0x334   :  { %537 = vmatmul.mubr.msk.bf16.vlgmr.msra.gmra.mrb[4].mxu1 %vm375_vm5, %v367_v48 }
 0x405   :  { %v472_v49 = vpop.f32.mrb[4].mxu0 }
 0x406   :  { %479 = vst.msk [vmem:[#allocation5 + $0x8] sm:$0xff] %vm46_vm0, %v472_v49  ;;  %v544_v1 = vpop.f32.mrb[5].mxu0 }
 0x407   :  { %v413_v5 = vpop.f32.mrb[4].mxu1  ;;  %v475_v50 = vpop.f32.mrb[6].mxu0 }
 0x408   :  { %478 = vst.msk [vmem:[#allocation5] sm:$0xff] %vm46_vm0, %v413_v5  ;;  %v538_v0 = vpop.f32.mrb[5].mxu1  ;;  %v545_v2 = vpop.f32.mrb[7].mxu0 }
 0x409   :  { %v416_v51 = vpop.f32.mrb[6].mxu1 }
 0x40a   :  { %617 = shalt.err (!%p614_p12)
}
 0x40b   :  { %s618_s27 = scalar_lea.hbm %s784_s7, 256 }
 0x40c   :  { %p619_p13 = scmp.ne.s32.totalorder %s784_s7, %s618_s27  ;;  %p622_p0 = scmp.lt.u32.totalorder %s618_s27, %s784_s7 }
 0x40e   :  { %p624_p1 = pnand %p622_p0, %p619_p13 }
 0x410   :  { %627 = shalt.err (!%p624_p1)
}
 0x411   :  { %491 = dma.vmem_to_hbm [thread:$0]  %s486_s23, 256, %s784_s7, [#allocation4], %s633_s11, %s633_s11, %s634_s12   ;;  %v539_v52 = vpop.f32.mrb[7].mxu1 }
 0x412   :  { %630 = dma.done.wait [#allocation4], 256  }
 0x413   :  { %631 = vsyncadd [#allocation4], 4294967040 }
 0x414   :  { %495 = vsyncpa [#allocation3], 1 }
 0x415   :  { %496 = vsyncpa [#allocation4], 1 }

</bundles_post_ra>
